<compile_context>
chip_gen: v7x
topology: tpu7x:2x2x1
jax: 0.10.0
libtpu: 0.0.40
codegen_flags: <defaults>
</compile_context>

<pallas_src>
import jax
import jax.numpy as jnp
from jax.experimental import pallas as pl
from jax.experimental.pallas import tpu as pltpu

F_IN = 40      # Linear in_features
F_OUT = 30     # Linear out_features
F_PAD = 128    # lane-dense padded output width
MAX_TB = 1024  # batch-tile cap (rows per grid step)


def _round_up(x, m):
    return (x + m - 1) // m * m


def _nest_mlp_kernel(x_ref, w_ref, b_ref, o_ref):
    # MXU matmul with f32 accumulation, then bias + ReLU on the VPU.
    y = jnp.dot(x_ref[...], w_ref[...], preferred_element_type=jnp.float32)
    y = y + b_ref[...]                       # (1, F_PAD) broadcasts over rows
    o_ref[...] = jnp.maximum(y, 0.0).astype(o_ref.dtype)


def nest_mlp_forward(x, w, b):
    """x: (B, 40) f32; w: (30, 40) f32 (PyTorch layout); b: (30,) f32.

    Returns relu(x @ w.T + b) with shape (B, 30).
    """
    B = x.shape[0]
    dtype = x.dtype

    # Zero-pad weight/bias to a lane-dense 128-wide output. Padded columns are
    # zero, so relu(0 + 0) = 0 and the slice at the end is exact.
    w_t = jnp.zeros((F_IN, F_PAD), dtype).at[:, :F_OUT].set(w.T.astype(dtype))
    b2d = jnp.zeros((1, F_PAD), dtype).at[:, :F_OUT].set(b.astype(dtype))

    # Batch tile: multiple of 8 sublanes, capped so double-buffered VMEM stays
    # small (per step ~ TB*512B in + TB*512B out, x2 buffers).
    tb = min(MAX_TB, _round_up(B, 8))
    b_pad = _round_up(B, tb)
    if b_pad != B:
        x = jnp.pad(x, ((0, b_pad - B), (0, 0)))

    grid = (b_pad // tb,)
    itemsize = jnp.dtype(dtype).itemsize
    cost = pl.CostEstimate(
        flops=2 * b_pad * F_IN * F_OUT,
        transcendentals=0,
        bytes_accessed=(b_pad * F_IN + b_pad * F_PAD + F_IN * F_PAD + F_PAD) * itemsize,
    )

    out = pl.pallas_call(
        _nest_mlp_kernel,
        out_shape=jax.ShapeDtypeStruct((b_pad, F_PAD), dtype),
        grid_spec=pltpu.PrefetchScalarGridSpec(
            num_scalar_prefetch=0,
            grid=grid,
            in_specs=[
                # x tile marches over the batch; last dim 40 == full array dim.
                pl.BlockSpec((tb, F_IN), lambda i: (i, 0)),
                # weight and bias stay resident across the whole grid.
                pl.BlockSpec((F_IN, F_PAD), lambda i: (0, 0)),
                pl.BlockSpec((1, F_PAD), lambda i: (0, 0)),
            ],
            out_specs=pl.BlockSpec((tb, F_PAD), lambda i: (i, 0)),
        ),
        compiler_params=pltpu.CompilerParams(
            # Batch tiles are independent -> shard across TCs on v7x.
            dimension_semantics=("parallel",),
        ),
        cost_estimate=cost,
    )(x, w_t, b2d)

    return out[:B, :F_OUT]


def init_params(key):
    # nn.Linear default init: uniform(-1/sqrt(fan_in), 1/sqrt(fan_in)).
    kw, kb = jax.random.split(key)
    bound = 1.0 / jnp.sqrt(jnp.float32(F_IN))
    w = jax.random.uniform(kw, (F_OUT, F_IN), jnp.float32, -bound, bound)  # (out, in)
    b = jax.random.uniform(kb, (F_OUT,), jnp.float32, -bound, bound)
    return w, b


if __name__ == "__main__":
    key = jax.random.PRNGKey(0)
    kx, kp = jax.random.split(key)

    B = 8  # small demo batch (not a multiple of TB path is also exercised by padding logic)
    x = jax.random.normal(kx, (B, F_IN), jnp.float32)
    w, b = init_params(kp)

    out = nest_mlp_forward(x, w, b)
    out = jax.block_until_ready(out)

    # Reference: relu(x @ W.T + b), same math as the PyTorch module.
    ref = jnp.maximum(x @ w.T + b, 0.0)
    assert out.shape == (B, F_OUT)
    assert jnp.allclose(out, ref, atol=1e-5, rtol=1e-5)

    print("KERNEL_OK")
</pallas_src>

<mosaic_0001>
module attributes {stable_mosaic.version = 11 : i64} {
  func.func @_nest_mlp_kernel(%arg0: i32, %arg1: memref<8x40xf32, #tpu.memory_space<vmem>>, %arg2: memref<40x128xf32, #tpu.memory_space<vmem>>, %arg3: memref<1x128xf32, #tpu.memory_space<vmem>>, %arg4: memref<8x128xf32, #tpu.memory_space<vmem>>) attributes {dimension_semantics = [#tpu.dimension_semantics<parallel>], iteration_bounds = array<i64: 1>, scalar_prefetch = 0 : i64, scratch_operands = 0 : i64, tpu.core_type = #tpu.core_type<tc>, window_params = [{transform_indices = @transform_0, window_bounds = array<i64: 8, 40>}, {pipeline_mode = #tpu.pipeline_mode<synchronous>, transform_indices = @transform_1, window_bounds = array<i64: 40, 128>}, {pipeline_mode = #tpu.pipeline_mode<synchronous>, transform_indices = @transform_2, window_bounds = array<i64: 1, 128>}, {transform_indices = @transform_3, window_bounds = array<i64: 8, 128>}]} {
    %c0 = arith.constant 0 : index
    %c0_0 = arith.constant 0 : index
    %0 = vector.load %arg1[%c0, %c0_0] : memref<8x40xf32, #tpu.memory_space<vmem>>, vector<8x40xf32>
    %c0_1 = arith.constant 0 : index
    %c0_2 = arith.constant 0 : index
    %1 = vector.load %arg2[%c0_1, %c0_2] : memref<40x128xf32, #tpu.memory_space<vmem>>, vector<40x128xf32>
    %cst = arith.constant dense<0.000000e+00> : vector<8x128xf32>
    %2 = tpu.matmul %0, %1, %cst {dimension_numbers = #tpu.dot_dimension_numbers<[1], [0], [0], [1], [0, 0, 1, 1], [], []>} : vector<8x40xf32>, vector<40x128xf32>, vector<8x128xf32> -> vector<8x128xf32>
    %c0_3 = arith.constant 0 : index
    %c0_4 = arith.constant 0 : index
    %3 = vector.load %arg3[%c0_3, %c0_4] : memref<1x128xf32, #tpu.memory_space<vmem>>, vector<1x128xf32>
    %4 = vector.broadcast %3 : vector<1x128xf32> to vector<8x128xf32>
    %5 = arith.addf %2, %4 : vector<8x128xf32>
    %cst_5 = arith.constant 0.000000e+00 : f32
    %6 = vector.broadcast %cst_5 : f32 to vector<8x128xf32>
    %7 = arith.maximumf %5, %6 : vector<8x128xf32>
    %c0_6 = arith.constant 0 : index
    %c0_7 = arith.constant 0 : index
    %8 = vector.load %arg4[%c0_6, %c0_7] : memref<8x128xf32, #tpu.memory_space<vmem>>, vector<8x128xf32>
    tpu.vector_store %arg4[%c0_6, %c0_7], %7 {strides = array<i32>} : memref<8x128xf32, #tpu.memory_space<vmem>>, vector<8x128xf32>,
    return
  }
  func.func @transform_0(%arg0: i32) -> (i32, i32) {
    %c0_i32 = arith.constant 0 : i32
    %c0_i32_0 = arith.constant 0 : i32
    return %arg0, %c0_i32 : i32, i32
  }
  func.func @transform_1(%arg0: i32) -> (i32, i32) {
    %c0_i32 = arith.constant 0 : i32
    %c0_i32_0 = arith.constant 0 : i32
    %c0_i32_1 = arith.constant 0 : i32
    return %c0_i32, %c0_i32_0 : i32, i32
  }
  func.func @transform_2(%arg0: i32) -> (i32, i32) {
    %c0_i32 = arith.constant 0 : i32
    %c0_i32_0 = arith.constant 0 : i32
    %c0_i32_1 = arith.constant 0 : i32
    return %c0_i32, %c0_i32_0 : i32, i32
  }
  func.func @transform_3(%arg0: i32) -> (i32, i32) {
    %c0_i32 = arith.constant 0 : i32
    %c0_i32_0 = arith.constant 0 : i32
    return %arg0, %c0_i32 : i32, i32
  }
}

</mosaic_0001>

<bundles_post_ra>
// kernel: tpu_custom_call.1
= control target key start
LH: loop header
LB: loop body
LE: loop exit
PB: predicated region body
PF: predicated region fallthrough
CT: control target
= control target key end

     0   :  { %8 = vsyncpa [#allocation3], 0  ;;  %s327_s0 = inlined_call_operand.hbm [shape: f32[8,40], index: 0, kind: input, shape index: {}]   ;;  %s328_s1 = inlined_call_operand.hbm [shape: f32[40,128], index: 1, kind: input, shape index: {}]   ;;  %s329_s2 = inlined_call_operand.vmem [shape: f32[1,128], index: 2, kind: input, shape index: {}]   ;;  %s330_s3 = inlined_call_operand.hbm [shape: f32[8,128], index: 3, kind: output, shape index: {}]  }
   0x1   :  { %9 = vsyncpa [#allocation6], 0 }
   0x2   :  { %10 = vsyncpa [#allocation4], 0  ;;  %s253_s12 = smov [#allocation2]   ;;  %s254_s14 = smov [#allocation5]  }
   0x3   :  { %s17_s13 = sshll.u32 %s253_s12, 4  ;;  %s26_s15 = sshll.u32 %s254_s14, 4  ;;  %s18_s13 = int_to_ptr.vmem [resolvable:$true] %s17_s13  ;;  %s281_s15 = int_to_ptr.vmem [resolvable:$true] %s26_s15 }
   0x4   :  { %s181_s18 = scalar_lea.hbm %s327_s0, 128 }
   0x5   :  { %p182_p0 = scmp.ne.s32.totalorder %s327_s0, %s181_s18  ;;  %p185_p1 = scmp.lt.u32.totalorder %s181_s18, %s327_s0 }
   0x7   :  { %p187_p2 = pnand %p185_p1, %p182_p0 }
   0x9   :  { %190 = shalt.err (!%p187_p2)
}
   0xa   :  { %s191_s23 = scalar_lea.vmem %s18_s13, 128  ;;  %p196_p4 = scmp.lt.s32.totalorder %s18_s13, %s18_s13 }
   0xb   :  { %p192_p3 = scmp.ne.s32.totalorder %s18_s13, %s191_s23  ;;  %p197_p5 = scmp.lt.s32.totalorder %s191_s23, %s191_s23 }
   0xd   :  { %p198_p6 = por %p197_p5, %p196_p4 }
   0xf   :  { %p199_p7 = pnand %p198_p6, %p192_p3 }
  0x11   :  { %202 = shalt.err (!%p199_p7)
}
  0x12   :  { %20 = dma.hbm_to_vmem [thread:$0]  %s327_s0, 128, %s18_s13, [#allocation3]  }
  0x13   :  { %s203_s28 = scalar_lea.hbm %s328_s1, 640 }
  0x14   :  { %p204_p8 = scmp.ne.s32.totalorder %s328_s1, %s203_s28  ;;  %p207_p9 = scmp.lt.u32.totalorder %s203_s28, %s328_s1 }
  0x16   :  { %p209_p10 = pnand %p207_p9, %p204_p8 }
  0x18   :  { %212 = shalt.err (!%p209_p10)
}
  0x19   :  { %s213_s6 = scalar_lea.vmem %s281_s15, 640  ;;  %p218_p12 = scmp.lt.s32.totalorder %s281_s15, %s281_s15 }
  0x1a   :  { %p214_p11 = scmp.ne.s32.totalorder %s281_s15, %s213_s6  ;;  %p219_p13 = scmp.lt.s32.totalorder %s213_s6, %s213_s6 }
  0x1c   :  { %p220_p0 = por %p219_p13, %p218_p12 }
  0x1e   :  { %p221_p1 = pnand %p220_p0, %p214_p11 }
  0x20   :  { %224 = shalt.err (!%p221_p1)
}
  0x21   :  { %s255_s0 = smov 128   ;;  %s256_s7 = smov 8  }
  0x22   :  { %32 = dma.hbm_to_vmem [thread:$0]  %s328_s1, 640, %s281_s15, [#allocation6], %s255_s0, %s255_s0, %s256_s7  }
  0x23   :  { %247 = dma.done.wait [#allocation3], 128  }
  0x24   :  { %248 = vsyncadd [#allocation3], 4294967168 }
  0x25   :  { %249 = dma.done.wait [#allocation6], 640  }
  0x26   :  { %250 = vsyncadd [#allocation6], 4294966656  ;;  %v257_v0 = vmov 0.0|0.0   ;;  %vm258_vm0 = vmmov 0   ;;  %v259_v1 = vmov 0.0   ;;  %v42_v2 = vld [vmem:[#allocation5] sm:$0xff] }
  0x27   :  { %167 = vmatprep.subr.bf16.mxu0 %v257_v0  ;;  %164 = vmatprep.mubr.msk.f32.mxu0 %vm258_vm0, %v259_v1  ;;  %v43_v3 = vld [vmem:[#allocation5 + $0x8] sm:$0xff]  ;;  %v44_v4 = vld [vmem:[#allocation5 + $0x10] sm:$0xff]  ;;  %v45_v6 = vld [vmem:[#allocation5 + $0x18] sm:$0xff]  ;;  %vm54_vm1 = vcmask 326656   ;;  %s260_s11 = smov [#allocation7]  }
  0x28   :  { %v168_v5 = vpack.c.bf16 %v43_v3, %v42_v2  ;;  %v171_v7 = vpack.c.bf16 %v45_v6, %v44_v4  ;;  %v46_v8 = vld [vmem:[#allocation5 + $0x20] sm:$0xff]  ;;  %v41_v9 = vld [vmem:[#allocation2] sm:$0xff]  ;;  %s136_s12 = sshll.u32 %s260_s11, 4  ;;  %s137_s12 = int_to_ptr.vmem [resolvable:$true] %s136_s12 }
  0x29   :  { %v146_v10 = vld [vmem:[%s329_s2] ss:$0 sm:$0xff]  ;;  %s225_s13 = scalar_lea.vmem %s137_s12, 128  ;;  %p230_p3 = scmp.lt.s32.totalorder %s137_s12, %s137_s12 }
  0x2a   :  { %169 = vmatpush3.bf16.msra.mxu0 %v168_v5  ;;  %p226_p2 = scmp.ne.s32.totalorder %s137_s12, %s225_s13  ;;  %p231_p4 = scmp.lt.s32.totalorder %s225_s13, %s225_s13 }
  0x2b   :  { %170 = vmatprep.subr.bf16.mxu0 %v257_v0 }
  0x2c   :  { %p232_p5 = por %p231_p4, %p230_p3 }
  0x2e   :  { %172 = vmatpush3.bf16.msra.mxu0 %v171_v7  ;;  %p233_p6 = pnand %p232_p5, %p226_p2 }
  0x2f   :  { %162 = vmatprep.subr.mxu0 %v259_v1 }
  0x32   :  { %163 = vmatpush3.msra.mxu0 %v46_v8 }
  0x33   :  { %165 = vmatmul.mubr.msk.f32.vlgmr.msra.gmra.mrb[0].mxu0 %vm54_vm1, %v41_v9 }
 0x106   :  { %v124_v11 = vpop.f32.mrb[0].mxu0 }
 0x107   :  { %v125_v12 = vadd.f32 %v146_v10, %v124_v11  ;;  %v166_v13 = vpop.f32.mrb[1].mxu0 }
 0x109   :  { %v128_v14 = vmax.f32 %v125_v12, 0.0 }
 0x10b   :  { %129 = vst [vmem:[#allocation7] sm:$0xff] %v128_v14 }
 0x10c   :  { %236 = shalt.err (!%p233_p6)
}
 0x10d   :  { %s237_s16 = scalar_lea.hbm %s330_s3, 128 }
 0x10e   :  { %p238_p7 = scmp.ne.s32.totalorder %s330_s3, %s237_s16  ;;  %p241_p8 = scmp.lt.u32.totalorder %s237_s16, %s330_s3 }
 0x110   :  { %p243_p9 = pnand %p241_p8, %p238_p7 }
 0x112   :  { %246 = shalt.err (!%p243_p9)
}
 0x113   :  { %139 = dma.vmem_to_hbm [thread:$0]  %s137_s12, 128, %s330_s3, [#allocation4]  }
 0x114   :  { %251 = dma.done.wait [#allocation4], 128  }
 0x115   :  { %252 = vsyncadd [#allocation4], 4294967168 }
 0x116   :  { %143 = vsyncpa [#allocation3], 1 }
 0x117   :  { %144 = vsyncpa [#allocation6], 1 }
 0x118   :  { %145 = vsyncpa [#allocation4], 1 }

</bundles_post_ra>
